<compile_context>
chip_gen: v5e
topology: v5e:2x2
jax: 0.10.0
libtpu: 0.0.40
codegen_flags: <defaults>
</compile_context>

<pallas_src>
import functools

import jax
import jax.numpy as jnp
from jax.experimental import pallas as pl
from jax.experimental.pallas import tpu as pltpu


def _encoder_layer_kernel(x_ref, bias_ref,
                          gamma_ref, beta_ref,
                          wqkv_ref, bqkv_ref,
                          wo_ref, bo_ref,
                          w1_ref, b1_ref, w2_ref, b2_ref,
                          out_ref, *, n_head, batch, seq):
    x = x_ref[...]            # (B*S, H) f32
    gamma = gamma_ref[...]    # (1, H)   f32
    beta = beta_ref[...]      # (1, H)   f32
    eps = jnp.float32(1e-6)

    H = x.shape[1]
    hd = H // n_head

    def layer_norm(v):        # f32 in / f32 out; single shared gamma/beta, as in the PyTorch module
        mu = jnp.mean(v, axis=-1, keepdims=True)
        var = jnp.mean((v - mu) ** 2, axis=-1, keepdims=True)
        return (v - mu) * jax.lax.rsqrt(var + eps) * gamma + beta

    # ---- self-attention on LN(x) -------------------------------------------
    xn = layer_norm(x)                                                     # (B*S, H) f32

    # fused QKV projection (scale already folded into Wq/bq wrapper-side):
    # columns are head-major: for head n -> [q_n | k_n | v_n] (3*hd each).
    qkv = jnp.dot(xn.astype(jnp.bfloat16), wqkv_ref[...],
                  preferred_element_type=jnp.float32) + bqkv_ref[...]      # (B*S, 3H) f32

    # single relayout: heads become the batch dim, q/k/v are lane slices
    qkv_h = (qkv.reshape(batch, seq, n_head, 3 * hd)
                .transpose(0, 2, 1, 3)
                .reshape(batch * n_head, seq, 3 * hd))                     # (B*n, S, 3hd)
    q = qkv_h[..., :hd]                                                    # (B*n, S, hd)
    k = qkv_h[..., hd:2 * hd]
    v = qkv_h[..., 2 * hd:]

    # scores + softmax for all (batch, head) at once; additive key bias was precomputed
    # wrapper-side (0 keep / -1e10 pad).  NOTE: differs from a hard where() only in the
    # degenerate all-keys-masked row case, which a valid padding mask never produces.
    sc = jnp.einsum('bqd,bkd->bqk', q, k,
                    preferred_element_type=jnp.float32) + bias_ref[...]    # (B*n, S, S)
    sc = sc - jnp.max(sc, axis=-1, keepdims=True)
    e = jnp.exp(sc)
    p = e * pl.reciprocal(jnp.sum(e, axis=-1, keepdims=True), approx=True)

    ctx = jnp.einsum('bqk,bkd->bqd', p, v,
                     preferred_element_type=jnp.float32)                   # (B*n, S, hd)
    ctx2d = (ctx.reshape(batch, n_head, seq, hd)
                .transpose(0, 2, 1, 3)
                .reshape(batch * seq, H))                                  # == concat(heads)
    attn = jnp.dot(ctx2d, wo_ref[...],
                   preferred_element_type=jnp.float32) + bo_ref[...]       # (B*S, H)

    y = x + attn                                                           # first residual (f32)

    # ---- position-wise FFN on LN(y), whole slab at once --------------------
    yn = layer_norm(y).astype(jnp.bfloat16)
    h1 = jnp.dot(yn, w1_ref[...], preferred_element_type=jnp.float32) + b1_ref[...]
    h1 = jnp.maximum(h1, 0.0)
    ffn = jnp.dot(h1.astype(jnp.bfloat16), w2_ref[...],
                  preferred_element_type=jnp.float32) + b2_ref[...]

    out_ref[...] = y + ffn                                                 # second residual


def prepare_encoder_params(params, *, n_head):
    """One-time (parameter-load time) weight re-layout + casts.

    Builds a fused, head-major-column Wqkv with 1/sqrt(hd) folded into the Q part,
    and casts the large-K matmul weights to bf16.  Called once, NOT per forward.
    """
    H = params["wq"].shape[0]
    hd = H // n_head
    scale = jnp.float32(1.0 / (hd ** 0.5))

    wq = (params["wq"] * scale).reshape(H, n_head, hd)
    wk = params["wk"].reshape(H, n_head, hd)
    wv = params["wv"].reshape(H, n_head, hd)
    # head-major columns: for head n -> [q_n | k_n | v_n]
    wqkv = jnp.concatenate([wq, wk, wv], axis=-1).reshape(H, 3 * H)

    bq = (params["bq"] * scale).reshape(n_head, hd)
    bk = params["bk"].reshape(n_head, hd)
    bv = params["bv"].reshape(n_head, hd)
    bqkv = jnp.concatenate([bq, bk, bv], axis=-1).reshape(1, 3 * H)

    return {
        "gamma": params["gamma"].astype(jnp.float32),
        "beta": params["beta"].astype(jnp.float32),
        "wqkv": wqkv.astype(jnp.bfloat16),           # large-K projection -> bf16 MXU operand
        "bqkv": bqkv.astype(jnp.float32),
        "wo": params["wo"].astype(jnp.float32),      # score/context path stays f32
        "bo": params["bo"].astype(jnp.float32),
        "w1": params["w1"].astype(jnp.bfloat16),
        "b1": params["b1"].astype(jnp.float32),
        "w2": params["w2"].astype(jnp.bfloat16),
        "b2": params["b2"].astype(jnp.float32),
    }


def encoder_layer(x, mask, prepared, *, n_head):
    """x: (B,S,H) f32, mask: (B,1,S) f32 (1=keep, 0=pad), prepared = prepare_encoder_params(...).

    Returns (B,S,H) f32.
    """
    B, S, H = x.shape

    x2d = x.reshape(B * S, H)   # single slab: one DMA in, one writeback

    # additive key bias precomputed from the mask (trivial wrapper HLO, per review);
    # robust threshold instead of exact float equality.
    bias = jnp.where(mask < 0.5, jnp.float32(-1e10), jnp.float32(0.0))       # (B, 1, S)
    bias = jnp.broadcast_to(bias, (B, n_head, S)).reshape(B * n_head, 1, S)  # (B*n, 1, S)

    args = (x2d, bias,
            prepared["gamma"], prepared["beta"],
            prepared["wqkv"], prepared["bqkv"],
            prepared["wo"], prepared["bo"],
            prepared["w1"], prepared["b1"], prepared["w2"], prepared["b2"])

    def full_spec(a):
        nd = a.ndim
        return pl.BlockSpec(a.shape, lambda i, _nd=nd: (0,) * _nd)

    grid_spec = pltpu.PrefetchScalarGridSpec(
        num_scalar_prefetch=0,
        grid=(1,),   # whole (tiny) problem in one step; no per-step pipeline overhead
        in_specs=[full_spec(a) for a in args],
        out_specs=pl.BlockSpec((B * S, H), lambda i: (0, 0)),
    )

    kernel = functools.partial(_encoder_layer_kernel, n_head=n_head, batch=B, seq=S)
    out2d = pl.pallas_call(
        kernel,
        out_shape=jax.ShapeDtypeStruct((B * S, H), jnp.float32),
        grid_spec=grid_spec,
        compiler_params=pltpu.CompilerParams(dimension_semantics=("arbitrary",)),
    )(*args)
    return out2d.reshape(B, S, H)


def _reference(x, mask, params, n_head):
    """Pure-JAX f32 reference of the same forward pass (PyTorch semantics)."""
    gamma, beta = params["gamma"], params["beta"]

    def ln(v):
        mu = jnp.mean(v, -1, keepdims=True)
        var = jnp.mean((v - mu) ** 2, -1, keepdims=True)
        return (v - mu) / jnp.sqrt(var + 1e-6) * gamma + beta

    B, S, H = x.shape
    hd = H // n_head
    xn = ln(x)
    q = xn @ params["wq"] + params["bq"]
    k = xn @ params["wk"] + params["bk"]
    v = xn @ params["wv"] + params["bv"]
    q = q.reshape(B, S, n_head, hd).transpose(0, 2, 1, 3)
    k = k.reshape(B, S, n_head, hd).transpose(0, 2, 1, 3)
    v = v.reshape(B, S, n_head, hd).transpose(0, 2, 1, 3)
    sc = jnp.einsum("bhqd,bhkd->bhqk", q, k) / jnp.sqrt(jnp.float32(hd))
    sc = jnp.where(mask[:, None, :, :] == 0.0, -1e10, sc)
    p = jax.nn.softmax(sc, -1)
    ctx = jnp.einsum("bhqk,bhkd->bhqd", p, v).transpose(0, 2, 1, 3).reshape(B, S, H)
    y = x + (ctx @ params["wo"] + params["bo"])
    yn = ln(y)
    ffn = jnp.maximum(yn @ params["w1"] + params["b1"], 0.0) @ params["w2"] + params["b2"]
    return y + ffn


if __name__ == "__main__":
    # params.hidden_dim=32, params.n_head=4, params.feed_forward_dim=64
    B, S, H, N_HEAD, FF = 2, 8, 32, 4, 64

    key = jax.random.PRNGKey(0)
    keys = jax.random.split(key, 16)

    def w(k, shape, scale=0.05):
        return (scale * jax.random.normal(k, shape)).astype(jnp.float32)

    params = {
        "gamma": jnp.ones((1, H), jnp.float32),
        "beta": jnp.zeros((1, H), jnp.float32),
        "wq": w(keys[0], (H, H)), "bq": w(keys[1], (1, H)),
        "wk": w(keys[2], (H, H)), "bk": w(keys[3], (1, H)),
        "wv": w(keys[4], (H, H)), "bv": w(keys[5], (1, H)),
        "wo": w(keys[6], (H, H)), "bo": w(keys[7], (1, H)),
        "w1": w(keys[8], (H, FF)), "b1": w(keys[9], (1, FF)),
        "w2": w(keys[10], (FF, H)), "b2": w(keys[11], (1, H)),
    }

    x = jax.random.normal(keys[12], (B, S, H), dtype=jnp.float32)
    # padding mask: last 2 positions of batch element 1 are padded
    mask = jnp.ones((B, 1, S), jnp.float32)
    mask = mask.at[1, 0, -2:].set(0.0)

    # one-time parameter preparation (hoisted out of the forward path)
    prepared = prepare_encoder_params(params, n_head=N_HEAD)

    out = encoder_layer(x, mask, prepared, n_head=N_HEAD)
    out = jax.block_until_ready(out)

    ref = _reference(x, mask, params, N_HEAD)
    assert out.shape == (B, S, H) and out.dtype == jnp.float32
    # bf16 projection weights + approx softmax reciprocal => slightly looser tolerance than pure f32
    assert jnp.allclose(out, ref, atol=1e-2, rtol=1e-2), "mismatch vs reference"

    print("KERNEL_OK")
</pallas_src>

<mosaic_0001>
module attributes {stable_mosaic.version = 11 : i64} {
  func.func @_encoder_layer_kernel(%arg0: i32, %arg1: memref<16x32xf32, #tpu.memory_space<vmem>>, %arg2: memref<8x1x8xf32, #tpu.memory_space<vmem>>, %arg3: memref<1x32xf32, #tpu.memory_space<vmem>>, %arg4: memref<1x32xf32, #tpu.memory_space<vmem>>, %arg5: memref<32x96xbf16, #tpu.memory_space<vmem>>, %arg6: memref<1x96xf32, #tpu.memory_space<vmem>>, %arg7: memref<32x32xf32, #tpu.memory_space<vmem>>, %arg8: memref<1x32xf32, #tpu.memory_space<vmem>>, %arg9: memref<32x64xbf16, #tpu.memory_space<vmem>>, %arg10: memref<1x64xf32, #tpu.memory_space<vmem>>, %arg11: memref<64x32xbf16, #tpu.memory_space<vmem>>, %arg12: memref<1x32xf32, #tpu.memory_space<vmem>>, %arg13: memref<16x32xf32, #tpu.memory_space<vmem>>) attributes {dimension_semantics = [#tpu.dimension_semantics<arbitrary>], iteration_bounds = array<i64: 1>, scalar_prefetch = 0 : i64, scratch_operands = 0 : i64, tpu.core_type = #tpu.core_type<tc>, window_params = [{pipeline_mode = #tpu.pipeline_mode<synchronous>, transform_indices = @transform_0, window_bounds = array<i64: 16, 32>}, {pipeline_mode = #tpu.pipeline_mode<synchronous>, transform_indices = @transform_1, window_bounds = array<i64: 8, 1, 8>}, {pipeline_mode = #tpu.pipeline_mode<synchronous>, transform_indices = @transform_2, window_bounds = array<i64: 1, 32>}, {pipeline_mode = #tpu.pipeline_mode<synchronous>, transform_indices = @transform_3, window_bounds = array<i64: 1, 32>}, {pipeline_mode = #tpu.pipeline_mode<synchronous>, transform_indices = @transform_4, window_bounds = array<i64: 32, 96>}, {pipeline_mode = #tpu.pipeline_mode<synchronous>, transform_indices = @transform_5, window_bounds = array<i64: 1, 96>}, {pipeline_mode = #tpu.pipeline_mode<synchronous>, transform_indices = @transform_6, window_bounds = array<i64: 32, 32>}, {pipeline_mode = #tpu.pipeline_mode<synchronous>, transform_indices = @transform_7, window_bounds = array<i64: 1, 32>}, {pipeline_mode = #tpu.pipeline_mode<synchronous>, transform_indices = @transform_8, window_bounds = array<i64: 32, 64>}, {pipeline_mode = #tpu.pipeline_mode<synchronous>, transform_indices = @transform_9, window_bounds = array<i64: 1, 64>}, {pipeline_mode = #tpu.pipeline_mode<synchronous>, transform_indices = @transform_10, window_bounds = array<i64: 64, 32>}, {pipeline_mode = #tpu.pipeline_mode<synchronous>, transform_indices = @transform_11, window_bounds = array<i64: 1, 32>}, {pipeline_mode = #tpu.pipeline_mode<synchronous>, transform_indices = @transform_12, window_bounds = array<i64: 16, 32>}]} {
    %c0 = arith.constant 0 : index
    %c0_0 = arith.constant 0 : index
    %0 = vector.load %arg1[%c0, %c0_0] : memref<16x32xf32, #tpu.memory_space<vmem>>, vector<16x32xf32>
    %c0_1 = arith.constant 0 : index
    %c0_2 = arith.constant 0 : index
    %1 = vector.load %arg3[%c0_1, %c0_2] : memref<1x32xf32, #tpu.memory_space<vmem>>, vector<1x32xf32>
    %c0_3 = arith.constant 0 : index
    %c0_4 = arith.constant 0 : index
    %2 = vector.load %arg4[%c0_3, %c0_4] : memref<1x32xf32, #tpu.memory_space<vmem>>, vector<1x32xf32>
    %cst = arith.constant dense<0.000000e+00> : vector<16xf32>
    %3 = vector.multi_reduction <add>, %0, %cst [1] : vector<16x32xf32> to vector<16xf32>
    %4 = vector.shape_cast %3 : vector<16xf32> to vector<16x1xf32>
    %cst_5 = arith.constant 3.200000e+01 : f32
    %5 = vector.broadcast %cst_5 : f32 to vector<16x1xf32>
    %6 = arith.divf %4, %5 : vector<16x1xf32>
    %7 = vector.broadcast %6 : vector<16x1xf32> to vector<16x32xf32>
    %8 = arith.subf %0, %7 : vector<16x32xf32>
    %9 = arith.mulf %8, %8 : vector<16x32xf32>
    %cst_6 = arith.constant dense<0.000000e+00> : vector<16xf32>
    %10 = vector.multi_reduction <add>, %9, %cst_6 [1] : vector<16x32xf32> to vector<16xf32>
    %11 = vector.shape_cast %10 : vector<16xf32> to vector<16x1xf32>
    %cst_7 = arith.constant 3.200000e+01 : f32
    %12 = vector.broadcast %cst_7 : f32 to vector<16x1xf32>
    %13 = arith.divf %11, %12 : vector<16x1xf32>
    %14 = vector.broadcast %6 : vector<16x1xf32> to vector<16x32xf32>
    %15 = arith.subf %0, %14 : vector<16x32xf32>
    %cst_8 = arith.constant 9.99999997E-7 : f32
    %16 = vector.broadcast %cst_8 : f32 to vector<16x1xf32>
    %17 = arith.addf %13, %16 : vector<16x1xf32>
    %18 = math.rsqrt %17 : vector<16x1xf32>
    %19 = vector.broadcast %18 : vector<16x1xf32> to vector<16x32xf32>
    %20 = arith.mulf %15, %19 : vector<16x32xf32>
    %21 = vector.broadcast %1 : vector<1x32xf32> to vector<16x32xf32>
    %22 = arith.mulf %20, %21 : vector<16x32xf32>
    %23 = vector.broadcast %2 : vector<1x32xf32> to vector<16x32xf32>
    %24 = arith.addf %22, %23 : vector<16x32xf32>
    %25 = arith.truncf %24 : vector<16x32xf32> to vector<16x32xbf16>
    %c0_9 = arith.constant 0 : index
    %c0_10 = arith.constant 0 : index
    %26 = vector.load %arg5[%c0_9, %c0_10] : memref<32x96xbf16, #tpu.memory_space<vmem>>, vector<32x96xbf16>
    %cst_11 = arith.constant dense<0.000000e+00> : vector<16x96xf32>
    %27 = tpu.matmul %25, %26, %cst_11 {dimension_numbers = #tpu.dot_dimension_numbers<[1], [0], [0], [1], [0, 0, 1, 1], [], []>} : vector<16x32xbf16>, vector<32x96xbf16>, vector<16x96xf32> -> vector<16x96xf32>
    %c0_12 = arith.constant 0 : index
    %c0_13 = arith.constant 0 : index
    %28 = vector.load %arg6[%c0_12, %c0_13] : memref<1x96xf32, #tpu.memory_space<vmem>>, vector<1x96xf32>
    %29 = vector.broadcast %28 : vector<1x96xf32> to vector<16x96xf32>
    %30 = arith.addf %27, %29 : vector<16x96xf32>
    %31 = vector.shape_cast %30 : vector<16x96xf32> to vector<2x8x4x24xf32>
    %32 = tpu.transpose %31, [0, 2, 1, 3] : vector<2x8x4x24xf32> -> vector<2x4x8x24xf32>
    %33 = vector.shape_cast %32 : vector<2x4x8x24xf32> to vector<8x8x24xf32>
    %34 = vector.extract_strided_slice %33 {offsets = [0, 0, 0], sizes = [8, 8, 8], strides = [1, 1, 1]} : vector<8x8x24xf32> to vector<8x8x8xf32>
    %35 = vector.extract_strided_slice %33 {offsets = [0, 0, 8], sizes = [8, 8, 8], strides = [1, 1, 1]} : vector<8x8x24xf32> to vector<8x8x8xf32>
    %36 = vector.extract_strided_slice %33 {offsets = [0, 0, 16], sizes = [8, 8, 8], strides = [1, 1, 1]} : vector<8x8x24xf32> to vector<8x8x8xf32>
    "tpu.trace_start"() <{level = 10 : i32, message = "bqd,bkd->bqk"}> : () -> ()
    %cst_14 = arith.constant dense<0.000000e+00> : vector<8x8x8xf32>
    %37 = tpu.matmul %34, %35, %cst_14 {dimension_numbers = #tpu.dot_dimension_numbers<[2], [2], [1], [1], [0, 0, 0, 1, 1, 1], [0], [0]>} : vector<8x8x8xf32>, vector<8x8x8xf32>, vector<8x8x8xf32> -> vector<8x8x8xf32>
    "tpu.trace_stop"() : () -> ()
    %c0_15 = arith.constant 0 : index
    %c0_16 = arith.constant 0 : index
    %c0_17 = arith.constant 0 : index
    %38 = vector.load %arg2[%c0_15, %c0_16, %c0_17] : memref<8x1x8xf32, #tpu.memory_space<vmem>>, vector<8x1x8xf32>
    %39 = vector.broadcast %38 : vector<8x1x8xf32> to vector<8x8x8xf32>
    %40 = arith.addf %37, %39 : vector<8x8x8xf32>
    %cst_18 = arith.constant dense<0xFF800000> : vector<8x8xf32>
    %41 = vector.multi_reduction <maximumf>, %40, %cst_18 [2] : vector<8x8x8xf32> to vector<8x8xf32>
    %42 = vector.shape_cast %41 : vector<8x8xf32> to vector<8x8x1xf32>
    %43 = vector.broadcast %42 : vector<8x8x1xf32> to vector<8x8x8xf32>
    %44 = arith.subf %40, %43 : vector<8x8x8xf32>
    %45 = math.exp %44 : vector<8x8x8xf32>
    %cst_19 = arith.constant dense<0.000000e+00> : vector<8x8xf32>
    %46 = vector.multi_reduction <add>, %45, %cst_19 [2] : vector<8x8x8xf32> to vector<8x8xf32>
    %47 = vector.shape_cast %46 : vector<8x8xf32> to vector<8x8x1xf32>
    %48 = tpu.reciprocal %47 {approx = true} : vector<8x8x1xf32> -> vector<8x8x1xf32>
    %49 = vector.broadcast %48 : vector<8x8x1xf32> to vector<8x8x8xf32>
    %50 = arith.mulf %45, %49 : vector<8x8x8xf32>
    "tpu.trace_start"() <{level = 10 : i32, message = "bqk,bkd->bqd"}> : () -> ()
    %cst_20 = arith.constant dense<0.000000e+00> : vector<8x8x8xf32>
    %51 = tpu.matmul %50, %36, %cst_20 {dimension_numbers = #tpu.dot_dimension_numbers<[2], [1], [1], [2], [0, 0, 0, 1, 1, 2], [0], [0]>} : vector<8x8x8xf32>, vector<8x8x8xf32>, vector<8x8x8xf32> -> vector<8x8x8xf32>
    "tpu.trace_stop"() : () -> ()
    %52 = vector.shape_cast %51 : vector<8x8x8xf32> to vector<2x4x8x8xf32>
    %53 = tpu.transpose %52, [0, 2, 1, 3] : vector<2x4x8x8xf32> -> vector<2x8x4x8xf32>
    %54 = vector.shape_cast %53 : vector<2x8x4x8xf32> to vector<16x32xf32>
    %c0_21 = arith.constant 0 : index
    %c0_22 = arith.constant 0 : index
    %55 = vector.load %arg7[%c0_21, %c0_22] : memref<32x32xf32, #tpu.memory_space<vmem>>, vector<32x32xf32>
    %cst_23 = arith.constant dense<0.000000e+00> : vector<16x32xf32>
    %56 = tpu.matmul %54, %55, %cst_23 {dimension_numbers = #tpu.dot_dimension_numbers<[1], [0], [0], [1], [0, 0, 1, 1], [], []>} : vector<16x32xf32>, vector<32x32xf32>, vector<16x32xf32> -> vector<16x32xf32>
    %c0_24 = arith.constant 0 : index
    %c0_25 = arith.constant 0 : index
    %57 = vector.load %arg8[%c0_24, %c0_25] : memref<1x32xf32, #tpu.memory_space<vmem>>, vector<1x32xf32>
    %58 = vector.broadcast %57 : vector<1x32xf32> to vector<16x32xf32>
    %59 = arith.addf %56, %58 : vector<16x32xf32>
    %60 = arith.addf %0, %59 : vector<16x32xf32>
    %cst_26 = arith.constant dense<0.000000e+00> : vector<16xf32>
    %61 = vector.multi_reduction <add>, %60, %cst_26 [1] : vector<16x32xf32> to vector<16xf32>
    %62 = vector.shape_cast %61 : vector<16xf32> to vector<16x1xf32>
    %cst_27 = arith.constant 3.200000e+01 : f32
    %63 = vector.broadcast %cst_27 : f32 to vector<16x1xf32>
    %64 = arith.divf %62, %63 : vector<16x1xf32>
    %65 = vector.broadcast %64 : vector<16x1xf32> to vector<16x32xf32>
    %66 = arith.subf %60, %65 : vector<16x32xf32>
    %67 = arith.mulf %66, %66 : vector<16x32xf32>
    %cst_28 = arith.constant dense<0.000000e+00> : vector<16xf32>
    %68 = vector.multi_reduction <add>, %67, %cst_28 [1] : vector<16x32xf32> to vector<16xf32>
    %69 = vector.shape_cast %68 : vector<16xf32> to vector<16x1xf32>
    %cst_29 = arith.constant 3.200000e+01 : f32
    %70 = vector.broadcast %cst_29 : f32 to vector<16x1xf32>
    %71 = arith.divf %69, %70 : vector<16x1xf32>
    %72 = vector.broadcast %64 : vector<16x1xf32> to vector<16x32xf32>
    %73 = arith.subf %60, %72 : vector<16x32xf32>
    %cst_30 = arith.constant 9.99999997E-7 : f32
    %74 = vector.broadcast %cst_30 : f32 to vector<16x1xf32>
    %75 = arith.addf %71, %74 : vector<16x1xf32>
    %76 = math.rsqrt %75 : vector<16x1xf32>
    %77 = vector.broadcast %76 : vector<16x1xf32> to vector<16x32xf32>
    %78 = arith.mulf %73, %77 : vector<16x32xf32>
    %79 = vector.broadcast %1 : vector<1x32xf32> to vector<16x32xf32>
    %80 = arith.mulf %78, %79 : vector<16x32xf32>
    %81 = vector.broadcast %2 : vector<1x32xf32> to vector<16x32xf32>
    %82 = arith.addf %80, %81 : vector<16x32xf32>
    %83 = arith.truncf %82 : vector<16x32xf32> to vector<16x32xbf16>
    %c0_31 = arith.constant 0 : index
    %c0_32 = arith.constant 0 : index
    %84 = vector.load %arg9[%c0_31, %c0_32] : memref<32x64xbf16, #tpu.memory_space<vmem>>, vector<32x64xbf16>
    %cst_33 = arith.constant dense<0.000000e+00> : vector<16x64xf32>
    %85 = tpu.matmul %83, %84, %cst_33 {dimension_numbers = #tpu.dot_dimension_numbers<[1], [0], [0], [1], [0, 0, 1, 1], [], []>} : vector<16x32xbf16>, vector<32x64xbf16>, vector<16x64xf32> -> vector<16x64xf32>
    %c0_34 = arith.constant 0 : index
    %c0_35 = arith.constant 0 : index
    %86 = vector.load %arg10[%c0_34, %c0_35] : memref<1x64xf32, #tpu.memory_space<vmem>>, vector<1x64xf32>
    %87 = vector.broadcast %86 : vector<1x64xf32> to vector<16x64xf32>
    %88 = arith.addf %85, %87 : vector<16x64xf32>
    %cst_36 = arith.constant 0.000000e+00 : f32
    %89 = vector.broadcast %cst_36 : f32 to vector<16x64xf32>
    %90 = arith.maximumf %88, %89 : vector<16x64xf32>
    %91 = arith.truncf %90 : vector<16x64xf32> to vector<16x64xbf16>
    %c0_37 = arith.constant 0 : index
    %c0_38 = arith.constant 0 : index
    %92 = vector.load %arg11[%c0_37, %c0_38] : memref<64x32xbf16, #tpu.memory_space<vmem>>, vector<64x32xbf16>
    %cst_39 = arith.constant dense<0.000000e+00> : vector<16x32xf32>
    %93 = tpu.matmul %91, %92, %cst_39 {dimension_numbers = #tpu.dot_dimension_numbers<[1], [0], [0], [1], [0, 0, 1, 1], [], []>} : vector<16x64xbf16>, vector<64x32xbf16>, vector<16x32xf32> -> vector<16x32xf32>
    %c0_40 = arith.constant 0 : index
    %c0_41 = arith.constant 0 : index
    %94 = vector.load %arg12[%c0_40, %c0_41] : memref<1x32xf32, #tpu.memory_space<vmem>>, vector<1x32xf32>
    %95 = vector.broadcast %94 : vector<1x32xf32> to vector<16x32xf32>
    %96 = arith.addf %93, %95 : vector<16x32xf32>
    %97 = arith.addf %60, %96 : vector<16x32xf32>
    %c0_42 = arith.constant 0 : index
    %c0_43 = arith.constant 0 : index
    %98 = vector.load %arg13[%c0_42, %c0_43] : memref<16x32xf32, #tpu.memory_space<vmem>>, vector<16x32xf32>
    tpu.vector_store %arg13[%c0_42, %c0_43], %97 {strides = array<i32>} : memref<16x32xf32, #tpu.memory_space<vmem>>, vector<16x32xf32>,
    return
  }
  func.func @transform_0(%arg0: i32) -> (i32, i32) {
    %c0_i32 = arith.constant 0 : i32
    %c0_i32_0 = arith.constant 0 : i32
    %c0_i32_1 = arith.constant 0 : i32
    return %c0_i32, %c0_i32_0 : i32, i32
  }
  func.func @transform_1(%arg0: i32) -> (i32, i32, i32) {
    %c0_i32 = arith.constant 0 : i32
    %c0_i32_0 = arith.constant 0 : i32
    %c0_i32_1 = arith.constant 0 : i32
    %c0_i32_2 = arith.constant 0 : i32
    return %c0_i32, %c0_i32_0, %c0_i32_1 : i32, i32, i32
  }
  func.func @transform_2(%arg0: i32) -> (i32, i32) {
    %c0_i32 = arith.constant 0 : i32
    %c0_i32_0 = arith.constant 0 : i32
    %c0_i32_1 = arith.constant 0 : i32
    return %c0_i32, %c0_i32_0 : i32, i32
  }
  func.func @transform_3(%arg0: i32) -> (i32, i32) {
    %c0_i32 = arith.constant 0 : i32
    %c0_i32_0 = arith.constant 0 : i32
    %c0_i32_1 = arith.constant 0 : i32
    return %c0_i32, %c0_i32_0 : i32, i32
  }
  func.func @transform_4(%arg0: i32) -> (i32, i32) {
    %c0_i32 = arith.constant 0 : i32
    %c0_i32_0 = arith.constant 0 : i32
    %c0_i32_1 = arith.constant 0 : i32
    return %c0_i32, %c0_i32_0 : i32, i32
  }
  func.func @transform_5(%arg0: i32) -> (i32, i32) {
    %c0_i32 = arith.constant 0 : i32
    %c0_i32_0 = arith.constant 0 : i32
    %c0_i32_1 = arith.constant 0 : i32
    return %c0_i32, %c0_i32_0 : i32, i32
  }
  func.func @transform_6(%arg0: i32) -> (i32, i32) {
    %c0_i32 = arith.constant 0 : i32
    %c0_i32_0 = arith.constant 0 : i32
    %c0_i32_1 = arith.constant 0 : i32
    return %c0_i32, %c0_i32_0 : i32, i32
  }
  func.func @transform_7(%arg0: i32) -> (i32, i32) {
    %c0_i32 = arith.constant 0 : i32
    %c0_i32_0 = arith.constant 0 : i32
    %c0_i32_1 = arith.constant 0 : i32
    return %c0_i32, %c0_i32_0 : i32, i32
  }
  func.func @transform_8(%arg0: i32) -> (i32, i32) {
    %c0_i32 = arith.constant 0 : i32
    %c0_i32_0 = arith.constant 0 : i32
    %c0_i32_1 = arith.constant 0 : i32
    return %c0_i32, %c0_i32_0 : i32, i32
  }
  func.func @transform_9(%arg0: i32) -> (i32, i32) {
    %c0_i32 = arith.constant 0 : i32
    %c0_i32_0 = arith.constant 0 : i32
    %c0_i32_1 = arith.constant 0 : i32
    return %c0_i32, %c0_i32_0 : i32, i32
  }
  func.func @transform_10(%arg0: i32) -> (i32, i32) {
    %c0_i32 = arith.constant 0 : i32
    %c0_i32_0 = arith.constant 0 : i32
    %c0_i32_1 = arith.constant 0 : i32
    return %c0_i32, %c0_i32_0 : i32, i32
  }
  func.func @transform_11(%arg0: i32) -> (i32, i32) {
    %c0_i32 = arith.constant 0 : i32
    %c0_i32_0 = arith.constant 0 : i32
    %c0_i32_1 = arith.constant 0 : i32
    return %c0_i32, %c0_i32_0 : i32, i32
  }
  func.func @transform_12(%arg0: i32) -> (i32, i32) {
    %c0_i32 = arith.constant 0 : i32
    %c0_i32_0 = arith.constant 0 : i32
    %c0_i32_1 = arith.constant 0 : i32
    return %c0_i32, %c0_i32_0 : i32, i32
  }
}

</mosaic_0001>

<bundles_post_ra>
// kernel: tpu_custom_call.1
= control target key start
LH: loop header
LB: loop body
LE: loop exit
PB: predicated region body
PF: predicated region fallthrough
CT: control target
= control target key end

     0   :  { %17 = vsyncpa [#allocation3], 0  ;;  %s2179_s0 = inlined_call_operand.vmem [shape: f32[16,32], index: 0, kind: input, shape index: {}]   ;;  %s2180_s1 = inlined_call_operand.hbm [shape: f32[8,1,8], index: 1, kind: input, shape index: {}]   ;;  %s2181_s2 = inlined_call_operand.vmem [shape: f32[1,32], index: 2, kind: input, shape index: {}]   ;;  %s2182_s3 = inlined_call_operand.vmem [shape: f32[1,32], index: 3, kind: input, shape index: {}]   ;;  %s2183_s4 = inlined_call_operand.hbm [shape: bf16[32,96], index: 4, kind: input, shape index: {}]   ;;  %s2184_s5 = inlined_call_operand.vmem [shape: f32[1,96], index: 5, kind: input, shape index: {}]   ;;  %s2185_s6 = inlined_call_operand.vmem [shape: f32[32,32], index: 6, kind: input, shape index: {}]   ;;  %s2186_s7 = inlined_call_operand.vmem [shape: f32[1,32], index: 7, kind: input, shape index: {}]   ;;  %s2187_s8 = inlined_call_operand.hbm [shape: bf16[32,64], index: 8, kind: input, shape index: {}]   ;;  %s2188_s9 = inlined_call_operand.vmem [shape: f32[1,64], index: 9, kind: input, shape index: {}]   ;;  %s2189_s10 = inlined_call_operand.vmem [shape: bf16[64,32], index: 10, kind: input, shape index: {}]   ;;  %s2190_s11 = inlined_call_operand.vmem [shape: f32[1,32], index: 11, kind: input, shape index: {}]   ;;  %s2191_s12 = inlined_call_operand.hbm [shape: f32[16,32], index: 12, kind: output, shape index: {}]  }
   0x1   :  { %18 = vsyncpa [#allocation6], 0  ;;  %s43_s23 = sshll.u32 %s2183_s4, 4  ;;  %s44_s23 = int_to_ptr.hbm [resolvable:$true] %s43_s23 }
   0x2   :  { %19 = vsyncpa [#allocation4], 0  ;;  %s1703_s24 = smov [#allocation5]   ;;  %s26_s28 = sshll.u32 %s2180_s1, 4  ;;  %s27_s28 = int_to_ptr.hbm [resolvable:$true] %s26_s28 }
   0x3   :  { %s45_s25 = sshll.u32 %s1703_s24, 4  ;;  %s1704_s29 = smov 64   ;;  %s46_s25 = int_to_ptr.vmem [resolvable:$true] %s45_s25 }
   0x4   :  { %s1705_s30 = smov 4   ;;  %s1706_s13 = smov [#allocation2]  }
   0x5   :  { %51 = dma.hbm_to_vmem [thread:$0]  %s44_s23, 256, %s46_s25, [#allocation6], %s1704_s29, %s1704_s29, %s1705_s30  }
   0x6   :  { %s28_s14 = sshll.u32 %s1706_s13, 4  ;;  %s1707_s15 = smov 16   ;;  %s29_s14 = int_to_ptr.vmem [resolvable:$true] %s28_s14 }
   0x7   :  { %s1708_s16 = smov 1   ;;  %s62_s18 = sshll.u32 %s2187_s8, 4  ;;  %s63_s18 = int_to_ptr.hbm [resolvable:$true] %s62_s18 }
   0x8   :  { %34 = dma.hbm_to_vmem [thread:$0]  %s27_s28, 128, %s29_s14, [#allocation3], %s1707_s15, %s1707_s15, %s1708_s16  }
   0x9   :  { %s1709_s19 = smov [#allocation7]  }
   0xa   :  { %s64_s20 = sshll.u32 %s1709_s19, 4  ;;  %s65_s20 = int_to_ptr.vmem [resolvable:$true] %s64_s20 }
   0xb   :  { %70 = dma.hbm_to_vmem [thread:$0]  %s63_s18, 256, %s65_s20, [#allocation6], %s1704_s29, %s1704_s29, %s1705_s30  }
   0xc   :  { %1697 = dma.done.wait [#allocation3], 128  }
   0xd   :  { %1698 = vsyncadd [#allocation3], 4294967168 }
   0xe   :  { %1699 = dma.done.wait [#allocation6], 512  }
   0xf   :  { %1700 = vsyncadd [#allocation6], 4294966784  ;;  %vm94_vm0 = vcmask 261120   ;;  %v90_v0 = vld [vmem:[%s2179_s0] sm:$0xff]  ;;  %v91_v2 = vld [vmem:[%s2179_s0 + $0x8] sm:$0xff]  ;;  %v1710_v4 = vmov 32.0  }
  0x10   :  { %v95_v1 = vsel %vm94_vm0, %v90_v0, 0.0  ;;  %v98_v3 = vsel %vm94_vm0, %v91_v2, 0.0  ;;  %1555 = vrcp.f32 %v1710_v4  ;;  %v1500_v21 = vld [vmem:[#allocation5 + $0x8] sm:$0xff]  ;;  %v1499_v23 = vld [vmem:[#allocation5] sm:$0xff]  ;;  %v1541_v42 = vld [vmem:[%s2181_s2] ss:$0 sm:$0xff] }
  0x11   :  { %96 = vadd.xlane.f32.xlu0 %v95_v1  ;;  %186 = vmatpush.bf16.msra.mxu0 %v1500_v21  ;;  %v1542_v47 = vld [vmem:[%s2182_s3] ss:$0 sm:$0xff]  ;;  %s1711_s29 = smov 56   ;;  %s1712_s30 = smov 104   ;;  %v1714_v59 = vmov 1983009808  }
  0x12   :  { %v1543_v52 = vld [vmem:[%s2184_s5] ss:$0 sm:$0xff]  ;;  %s1713_s13 = smov 80   ;;  %v220_v60 = vunpack.c.l.s4 %v1714_v59  ;;  %vm215_vm8 = vcmask 1047556   ;;  %v1715_v4 = vmov 1934713408  }
  0x13   :  { %s1716_s5 = smov 120   ;;  %vm470_vm9 = vcmask 64512   ;;  %s1717_s14 = smov 112   ;;  %vm1226_vm10 = vcmask 130048   ;;  %vm1229_vm11 = vcmask 195584  }
  0x14   :  { %v1824_v63 = vunpack.c.0.s8 %v220_v60  ;;  %s1718_s16 = smov 8   ;;  %s1719_s4 = smov 24  }
  0x15   :  { %187 = vmatpush.bf16.msra.mxu0 %v1499_v23  ;;  %s1720_s1 = smov [#allocation8]  }
  0x16   :  { %v1556_v5 = vpop.eup %1555  ;;  %s1422_s21 = sshll.u32 %s1720_s1, 4  ;;  %s1423_s21 = int_to_ptr.vmem [resolvable:$true] %s1422_s21 }
  0x17   :  { %v102_v6 = vmul.f32 32.0, %v1556_v5  ;;  %vm106_vm1 = vweird.f32 %v1556_v5 }
  0x19   :  { %99 = vadd.xlane.f32.xlu0 %v98_v3  ;;  %v103_v7 = vsub.f32 1.0, %v102_v6 }
  0x1b   :  { %v104_v8 = vmul.f32 %v1556_v5, %v103_v7 }
  0x1d   :  { %v105_v9 = vadd.f32 %v1556_v5, %v104_v8 }
  0x1f   :  { %v1806_v10 = vsel %vm106_vm1, %v1556_v5, %v105_v9  ;;  %v244_v5 = vunpack.c.l.s4 %v1715_v4 }
  0x84   :  { %v97_v11 = vpop.xlane.xlu0 %96 }
  0x85   :  { %v108_v12 = vmul.f32 %v1806_v10, %v97_v11 }
  0x87   :  { %v110_v13 = vsub.f32 %v90_v0, %v108_v12 }
  0x89   :  { %v112_v14 = vmul.f32 %v110_v13, %v110_v13 }
  0x8b   :  { %v114_v15 = vsel %vm94_vm0, %v112_v14, 0.0  ;;  %v1832_v14 = vunpack.c.0.s8 %v244_v5 }
  0x8c   :  { %115 = vadd.xlane.f32.xlu1 %v114_v15  ;;  %v100_v16 = vpop.xlane.xlu0 %99 }
  0x8d   :  { %v109_v17 = vmul.f32 %v1806_v10, %v100_v16 }
  0x8f   :  { %v111_v18 = vsub.f32 %v91_v2, %v109_v17 }
  0x91   :  { %v113_v19 = vmul.f32 %v111_v18, %v111_v18 }
  0x93   :  { %v117_v20 = vsel %vm94_vm0, %v113_v19, 0.0 }
  0x94   :  { %118 = vadd.xlane.f32.xlu1 %v117_v20 }
  0xff   :  { %v116_v22 = vpop.xlane.xlu1 %115 }
 0x100   :  { %v120_v24 = vmul.f32 %v116_v22, %v1806_v10 }
 0x102   :  { %v122_v25 = vadd.f32 1e-06, %v120_v24 }
 0x104   :  { %1557 = vrsqrt.f32 %v122_v25  ;;  %vm130_vm3 = vweird.f32 %v122_v25 }
 0x107   :  { %v119_v26 = vpop.xlane.xlu1 %118 }
 0x108   :  { %v121_v27 = vmul.f32 %v119_v26, %v1806_v10 }
 0x10a   :  { %v1558_v28 = vpop.eup %1557  ;;  %v123_v29 = vadd.f32 1e-06, %v121_v27 }
 0x10b   :  { %v125_v30 = vmul.f32 %v1558_v28, %v122_v25  ;;  %vm131_vm2 = vweird.f32 %v1558_v28 }
 0x10c   :  { %1559 = vrsqrt.f32 %v123_v29  ;;  %vm132_vm4 = vmor %vm130_vm3, %vm131_vm2  ;;  %vm140_vm6 = vweird.f32 %v123_v29  ;;  %vm1396_vm3 = vcmask 523264  }
 0x10d   :  { %v126_v31 = vmul.f32 %v1558_v28, %v125_v30 }
 0x10f   :  { %v127_v32 = vmul.f32 0.5, %v126_v31 }
 0x111   :  { %v128_v33 = vsub.f32 1.5, %v127_v32 }
 0x112   :  { %v1560_v34 = vpop.eup %1559 }
 0x113   :  { %v129_v35 = vmul.f32 %v1558_v28, %v128_v33  ;;  %v135_v36 = vmul.f32 %v1560_v34, %v123_v29  ;;  %vm141_vm5 = vweird.f32 %v1560_v34 }
 0x114   :  { %vm142_vm7 = vmor %vm140_vm6, %vm141_vm5 }
 0x115   :  { %v136_v37 = vmul.f32 %v1560_v34, %v135_v36  ;;  %v133_v38 = vsel %vm132_vm4, %v1558_v28, %v129_v35 }
 0x116   :  { %v144_v41 = vmul.f32 %v133_v38, %v110_v13 }
 0x117   :  { %v137_v39 = vmul.f32 0.5, %v136_v37 }
 0x118   :  { %v149_v46 = vmul.f32 %v1541_v42, %v144_v41 }
 0x119   :  { %v138_v40 = vsub.f32 1.5, %v137_v39 }
 0x11a   :  { %v154_v49 = vadd.f32 %v1542_v47, %v149_v46 }
 0x11b   :  { %v139_v43 = vmul.f32 %v1560_v34, %v138_v40 }
 0x11d   :  { %v143_v44 = vsel %vm142_vm7, %v1560_v34, %v139_v43 }
 0x11e   :  { %v145_v45 = vmul.f32 %v143_v44, %v111_v18 }
 0x120   :  { %v150_v48 = vmul.f32 %v1541_v42, %v145_v45 }
 0x122   :  { %v155_v50 = vadd.f32 %v1542_v47, %v150_v48 }
 0x124   :  { %v156_v51 = vpack.c.bf16 %v155_v50, %v154_v49 }
 0x126   :  { %1446 = vmatmul.msk.bf16.vlgmr.msra.gmra.mxu0 %vm94_vm0, %v156_v51 }
 0x1a3   :  { %v189_v53 = vpop.f32.mrf.mxu0 }
 0x1a4   :  { %v190_v54 = vadd.f32 %v1543_v52, %v189_v53 }
 0x1a6   :  { %208 = vrot.lane.b32.xlu0 %v190_v54, %s1711_s29  ;;  %196 = vrot.lane.b32.xlu2 %v190_v54, %s1712_s30  ;;  %v217_v62 = vrot.slane %v190_v54, 4 }
 0x1ab   :  { %v191_v55 = vpop.f32.mrf.mxu0 }
 0x1ac   :  { %v192_v56 = vadd.f32 %v1543_v52, %v191_v55 }
 0x1ae   :  { %198 = vrot.lane.b32.xlu1 %v192_v56, %s1712_s30  ;;  %202 = vrot.lane.b32.xlu2 %v190_v54, %s1713_s13  ;;  %v273_v7 = vrot.slane %v192_v56, 4 }
 0x1b6   :  { %204 = vrot.lane.b32.xlu2 %v192_v56, %s1713_s13 }
 0x1be   :  { %210 = vrot.lane.b32.xlu2 %v192_v56, %s1711_s29 }
 0x200   :  { %v197_v57 = vpop.permute.xlu2 %196 }
 0x201   :  { %v229_v8 = vrot.slane %v197_v57, 4 }
 0x208   :  { %v203_v58 = vpop.permute.xlu2 %202 }
 0x209   :  { %v214_v61 = vrot.slane %v203_v58, 4  ;;  %v218_v1 = vsel %vm215_vm8, %v203_v58, %v217_v62 }
 0x20a   :  { %v226_v6 = vperm.slane %v218_v1, %v1824_v63 }
 0x20b   :  { %v216_v2 = vsel %vm215_vm8, %v214_v61, %v190_v54 }
 0x20c   :  { %v222_v9 = vperm.slane %v216_v2, %v1824_v63  ;;  %v253_v17 = vrot.slane %v226_v6, 4 }
 0x20e   :  { %v241_v19 = vrot.slane %v222_v9, 4 }
 0x210   :  { %v205_v0 = vpop.permute.xlu2 %204 }
 0x211   :  { %v271_v3 = vrot.slane %v205_v0, 4  ;;  %v274_v11 = vsel %vm215_vm8, %v205_v0, %v273_v7 }
 0x212   :  { %v282_v20 = vperm.slane %v274_v11, %v1824_v63 }
 0x213   :  { %v272_v13 = vsel %vm215_vm8, %v271_v3, %v192_v56 }
 0x214   :  { %v278_v22 = vperm.slane %v272_v13, %v1824_v63  ;;  %v309_v35 = vrot.slane %v282_v20, 4 }
 0x216   :  { %v297_v34 = vrot.slane %v278_v22, 4 }
 0x218   :  { %v209_v12 = vpop.permute.xlu0 %208  ;;  %v211_v27 = vpop.permute.xlu2 %210 }
 0x219   :  { %v227_v15 = vrot.slane %v209_v12, 4  ;;  %v230_v16 = vsel %vm215_vm8, %v209_v12, %v229_v8  ;;  %v283_v37 = vrot.slane %v211_v27, 4 }
 0x21a   :  { %v238_v18 = vperm.slane %v230_v16, %v1824_v63 }
 0x21b   :  { %v228_v21 = vsel %vm215_vm8, %v227_v15, %v197_v57 }
 0x21c   :  { %v234_v23 = vperm.slane %v228_v21, %v1824_v63  ;;  %v251_v24 = vrot.slane %v238_v18, 4  ;;  %v254_v25 = vsel %vm215_vm8, %v238_v18, %v253_v17 }
 0x21d   :  { %v262_v26 = vperm.slane %v254_v25, %v1832_v14 }
 0x21e   :  { %v239_v28 = vrot.slane %v234_v23, 4  ;;  %v242_v29 = vsel %vm215_vm8, %v234_v23, %v241_v19  ;;  %v252_v30 = vsel %vm215_vm8, %v251_v24, %v226_v6 }
 0x21f   :  { %v250_v31 = vperm.slane %v242_v29, %v1832_v14  ;;  %v258_v32 = vperm.slane %v252_v30, %v1832_v14  ;;  %v269_v33 = vrot.slane %v262_v26, 4 }
 0x220   :  { %v240_v36 = vsel %vm215_vm8, %v239_v28, %v222_v9  ;;  %v199_v38 = vpop.permute.xlu1 %198 }
 0x221   :  { %v246_v39 = vperm.slane %v240_v36, %v1832_v14  ;;  %v265_v40 = vrot.slane %v250_v31, 4  ;;  %v267_v41 = vrot.slane %v258_v32, 4  ;;  %v270_v42 = vsel %vm215_vm8, 0.0, %v269_v33 }
 0x222   :  { %v338_v43 = vsel %vm215_vm8, %v269_v33, %v258_v32  ;;  %v343_v44 = vrot.slane %v270_v42, 4  ;;  %v284_v45 = vsel %vm215_vm8, %v283_v37, %v199_v38  ;;  %v285_v46 = vrot.slane %v199_v38, 4 }
 0x223   :  { %v263_v47 = vrot.slane %v246_v39, 4  ;;  %v266_v48 = vsel %vm215_vm8, 0.0, %v265_v40  ;;  %v268_v49 = vsel %vm215_vm8, 0.0, %v267_v41  ;;  %v342_v50 = vperm.slane %v338_v43, %v1824_v63 }
 0x224   :  { %v332_v51 = vrot.slane %v266_v48, 4  ;;  %v286_v52 = vsel %vm215_vm8, %v211_v27, %v285_v46  ;;  %v290_v53 = vperm.slane %v284_v45, %v1824_v63  ;;  %v327_v54 = vsel %vm215_vm8, %v265_v40, %v246_v39 }
 0x225   :  { %v294_v55 = vperm.slane %v286_v52, %v1824_v63  ;;  %v264_v56 = vsel %vm215_vm8, 0.0, %v263_v47  ;;  %v331_v57 = vperm.slane %v327_v54, %v1824_v63  ;;  %v344_v58 = vsel %vm215_vm8, %v343_v44, %v268_v49 }
 0x226   :  { %v295_v59 = vrot.slane %v290_v53, 4  ;;  %v298_v60 = vsel %vm215_vm8, %v290_v53, %v297_v34  ;;  %v333_v61 = vsel %vm215_vm8, %v332_v51, %v264_v56  ;;  %v348_v62 = vperm.slane %v344_v58, %v1824_v63 }
 0x227   :  { %v306_v0 = vperm.slane %v298_v60, %v1832_v14  ;;  %v307_v1 = vrot.slane %v294_v55, 4  ;;  %v310_v2 = vsel %vm215_vm8, %v294_v55, %v309_v35  ;;  %v337_v3 = vperm.slane %v333_v61, %v1824_v63 }
 0x228   :  { %v296_v4 = vsel %vm215_vm8, %v295_v59, %v278_v22  ;;  %v318_v5 = vperm.slane %v310_v2, %v1832_v14  ;;  %v351_v6 = vrot.slane %v331_v57, 4  ;;  %v363_v7 = vrot.slane %v342_v50, 4 }
 0x229   :  { %v302_v8 = vperm.slane %v296_v4, %v1832_v14  ;;  %v308_v9 = vsel %vm215_vm8, %v307_v1, %v282_v20  ;;  %v321_v11 = vrot.slane %v306_v0, 4  ;;  %v349_v12 = vrot.slane %v337_v3, 4 }
 0x22a   :  { %v314_v13 = vperm.slane %v308_v9, %v1832_v14  ;;  %v325_v15 = vrot.slane %v318_v5, 4  ;;  %v352_v16 = vsel %vm215_vm8, %v337_v3, %v351_v6  ;;  %v364_v17 = vsel %vm215_vm8, %v348_v62, %v363_v7 }
 0x22b   :  { %v319_v18 = vrot.slane %v302_v8, 4  ;;  %v322_v19 = vsel %vm215_vm8, 0.0, %v321_v11  ;;  %v381_v21 = vsel %vm215_vm8, %v321_v11, %v302_v8  ;;  %v360_v22 = vperm.slane %v352_v16, %v1832_v14  ;;  %v1544_v16 = vld [vmem:[#allocation2] ss:$0 sm:$0xff] }
 0x22c   :  { %v323_v23 = vrot.slane %v314_v13, 4  ;;  %v326_v24 = vsel %vm215_vm8, 0.0, %v325_v15  ;;  %v386_v20 = vrot.slane %v322_v19, 4  ;;  %v372_v25 = vperm.slane %v364_v17, %v1832_v14 }
 0x22d   :  { %v320_v26 = vsel %vm215_vm8, 0.0, %v319_v18  ;;  %v397_v27 = vrot.slane %v326_v24, 4  ;;  %v350_v28 = vsel %vm215_vm8, %v349_v12, %v331_v57  ;;  %v361_v29 = vrot.slane %v348_v62, 4  ;;  %v1547_v24 = vld [vmem:[#allocation2 + $0x3] ss:$0 sm:$0xff] }
 0x22e   :  { %v387_v30 = vsel %vm215_vm8, %v386_v20, %v320_v26  ;;  %v377_v31 = vrot.slane %v372_v25, 4  ;;  %v356_v32 = vperm.slane %v350_v28, %v1832_v14  ;;  %v324_v33 = vsel %vm215_vm8, 0.0, %v323_v23  ;;  %v1548_v28 = vld [vmem:[#allocation2 + $0x5] ss:$0 sm:$0xff] }
 0x22f   :  { %v362_v34 = vsel %vm215_vm8, %v361_v29, %v342_v50  ;;  %v391_v35 = vperm.slane %v387_v30, %v1824_v63  ;;  %v392_v36 = vsel %vm215_vm8, %v325_v15, %v314_v13  ;;  %v385_v41 = vperm.slane %v381_v21, %v1824_v63  ;;  %v1545_v21 = vld [vmem:[#allocation2 + $0x2] ss:$0 sm:$0xff] }
 0x230   :  { %v1888_v37 = vsel %vm215_vm8, %v377_v31, %v360_v22  ;;  %v368_v38 = vperm.slane %v362_v34, %v1832_v14  ;;  %v375_v39 = vrot.slane %v356_v32, 4  ;;  %v396_v40 = vperm.slane %v392_v36, %v1824_v63  ;;  %v1550_v31 = vld [vmem:[#allocation2 + $0x6] ss:$0 sm:$0xff]  ;;  %v1546_v36 = vld [vmem:[#allocation2 + $0x1] ss:$0 sm:$0xff] }
 0x231   :  { %523 = vrot.lane.b32.xlu1 %v1888_v37, %s1716_s5  ;;  %v398_v42 = vsel %vm215_vm8, %v397_v27, %v324_v33  ;;  %v403_v43 = vrot.slane %v391_v35, 4  ;;  %v405_v52 = vrot.slane %v385_v41, 4  ;;  %v379_v55 = vrot.slane %v360_v22, 4 }
 0x232   :  { %v373_v44 = vrot.slane %v368_v38, 4  ;;  %v1897_v45 = vsel %vm215_vm8, %v368_v38, %v375_v39  ;;  %v402_v46 = vperm.slane %v398_v42, %v1824_v63  ;;  %v417_v48 = vrot.slane %v396_v40, 4  ;;  %v1549_v38 = vld [vmem:[#allocation2 + $0x4] ss:$0 sm:$0xff] }
 0x233   :  { %496 = vrot.lane.b32.xlu0 %v1897_v45, %s1716_s5  ;;  %v404_v47 = vsel %vm215_vm8, %v403_v43, %v385_v41  ;;  %v406_v60 = vsel %vm215_vm8, %v391_v35, %v405_v52  ;;  %v1919_v61 = vsel %vm215_vm8, %v372_v25, %v379_v55  ;;  %v1551_v41 = vld [vmem:[#allocation2 + $0x7] ss:$0 sm:$0xff] }
 0x234   :  { %v1904_v49 = vsel %vm215_vm8, %v373_v44, %v356_v32  ;;  %v410_v50 = vperm.slane %v404_v47, %v1832_v14  ;;  %v415_v51 = vrot.slane %v402_v46, 4  ;;  %v418_v57 = vsel %vm215_vm8, %v402_v46, %v417_v48 }
 0x235   :  { %468 = vrot.lane.b32.xlu2 %v1904_v49, %s1716_s5  ;;  %v426_v62 = vperm.slane %v418_v57, %v1832_v14  ;;  %v414_v1 = vperm.slane %v406_v60, %v1832_v14 }
 0x236   :  { %v416_v53 = vsel %vm215_vm8, %v415_v51, %v396_v40  ;;  %v429_v54 = vrot.slane %v410_v50, 4  ;;  %v1526_v51 = vpack.i.bf16 %v1919_v61, %v1904_v49 }
 0x237   :  { %v422_v56 = vperm.slane %v416_v53, %v1832_v14  ;;  %v431_v2 = vrot.slane %v426_v62, 4  ;;  %v433_v3 = vrot.slane %v414_v1, 4 }
 0x239   :  { %v1913_v58 = vsel %vm215_vm8, %v422_v56, %v429_v54  ;;  %v427_v59 = vrot.slane %v422_v56, 4  ;;  %v1931_v4 = vsel %vm215_vm8, %v431_v2, %v414_v1  ;;  %v1936_v5 = vsel %vm215_vm8, %v426_v62, %v433_v3 }
 0x23a   :  { %604 = vrot.lane.b32.xlu1 %v1913_v58, %s1716_s5 }
 0x23b   :  { %550 = vrot.lane.b32.xlu0 %v1919_v61, %s1716_s5  ;;  %v1925_v0 = vsel %vm215_vm8, %v427_v59, %v410_v50 }
 0x23d   :  { %577 = vrot.lane.b32.xlu2 %v1925_v0, %s1716_s5 }
 0x243   :  { %631 = vrot.lane.b32.xlu0 %v1931_v4, %s1716_s5 }
 0x245   :  { %658 = vrot.lane.b32.xlu2 %v1936_v5, %s1716_s5 }
 0x28f   :  { %v469_v6 = vpop.permute.xlu2 %468 }
 0x290   :  { %1447 = vmatpush.xpose.msk.msra.mxu2 %vm470_vm9, %v469_v6 }
 0x293   :  { %1448 = vmatmul.msk.f32.vlgmr.msra.gmra.mxu2 %vm470_vm9, %v1904_v49 }
 0x297   :  { %v578_v7 = vpop.permute.xlu2 %577 }
 0x29f   :  { %v659_v11 = vpop.permute.xlu2 %658 }
 0x2a3   :  { %v524_v8 = vpop.permute.xlu1 %523 }
 0x2a4   :  { %1451 = vmatpush.xpose.msk.msra.mxu3 %vm470_vm9, %v524_v8 }
 0x2a5   :  { %v497_v9 = vpop.permute.xlu0 %496 }
 0x2a6   :  { %1449 = vmatpush.xpose.msk.msrb.mxu2 %vm470_vm9, %v497_v9 }
 0x2a7   :  { %1452 = vmatmul.msk.f32.vlgmr.msra.gmra.mxu3 %vm470_vm9, %v1888_v37 }
 0x2a9   :  { %1450 = vmatmul.msk.f32.vlgmr.msrb.gmra.mxu2 %vm470_vm9, %v1897_v45 }
 0x2aa   :  { %1455 = vmatpush.xpose.msk.msra.mxu2 %vm470_vm9, %v578_v7 }
 0x2ac   :  { %v605_v12 = vpop.permute.xlu1 %604 }
 0x2ad   :  { %1457 = vmatpush.xpose.msk.msrb.mxu3 %vm470_vm9, %v605_v12  ;;  %v551_v13 = vpop.permute.xlu0 %550 }
 0x2ae   :  { %1461 = vmatpush.xpose.msk.msrb.mxu2 %vm470_vm9, %v659_v11  ;;  %1453 = vmatpush.xpose.msk.msra.mxu1 %vm470_vm9, %v551_v13 }
 0x2b0   :  { %1458 = vmatmul.msk.f32.vlgmr.msrb.gmra.mxu3 %vm470_vm9, %v1913_v58 }
 0x2b1   :  { %1454 = vmatmul.msk.f32.vlgmr.msra.gmra.mxu1 %vm470_vm9, %v1919_v61  ;;  %1456 = vmatmul.msk.f32.vlgmr.msra.gmra.mxu2 %vm470_vm9, %v1925_v0 }
 0x2b5   :  { %v632_v15 = vpop.permute.xlu0 %631 }
 0x2b6   :  { %1459 = vmatpush.xpose.msk.msrb.mxu1 %vm470_vm9, %v632_v15 }
 0x2b9   :  { %1460 = vmatmul.msk.f32.vlgmr.msrb.gmra.mxu1 %vm470_vm9, %v1931_v4  ;;  %1462 = vmatmul.msk.f32.vlgmr.msrb.gmra.mxu2 %vm470_vm9, %v1936_v5 }
 0x316   :  { %v492_v17 = vpop.f32.mrf.mxu2 }
 0x317   :  { %v493_v18 = vadd.f32 %v1544_v16, %v492_v17 }
 0x319   :  { %v684_v19 = vsel %vm470_vm9, %v493_v18, -inf }
 0x31a   :  { %685 = vmax.xlane.f32.xlu2 %v684_v19 }
 0x32a   :  { %v546_v22 = vpop.f32.mrf.mxu3 }
 0x32b   :  { %v547_v23 = vadd.f32 %v1545_v21, %v546_v22 }
 0x32c   :  { %v519_v20 = vpop.f32.mrf.mxu2 }
 0x32d   :  { %v690_v25 = vsel %vm470_vm9, %v547_v23, -inf  ;;  %v520_v43 = vadd.f32 %v1546_v36, %v519_v20 }
 0x32e   :  { %691 = vmax.xlane.f32.xlu0 %v690_v25  ;;  %v573_v26 = vpop.f32.mrf.mxu1 }
 0x32f   :  { %v574_v27 = vadd.f32 %v1547_v24, %v573_v26  ;;  %v687_v48 = vsel %vm470_vm9, %v520_v43, -inf }
 0x331   :  { %v693_v29 = vsel %vm470_vm9, %v574_v27, -inf }
 0x332   :  { %694 = vmax.xlane.f32.xlu1 %v693_v29 }
 0x333   :  { %v627_v30 = vpop.f32.mrf.mxu3 }
 0x334   :  { %v600_v32 = vpop.f32.mrf.mxu2  ;;  %v1967_v33 = vadd.f32 %v1548_v28, %v627_v30 }
 0x335   :  { %v601_v44 = vadd.f32 %v1549_v38, %v600_v32  ;;  %v1531_v38 = vpack.i.bf16 %v1897_v45, %v1888_v37 }
 0x336   :  { %v654_v34 = vpop.f32.mrf.mxu1  ;;  %v699_v39 = vsel %vm470_vm9, %v1967_v33, -inf }
 0x337   :  { %v655_v35 = vadd.f32 %v1550_v31, %v654_v34  ;;  %v696_v50 = vsel %vm470_vm9, %v601_v44, -inf }
 0x339   :  { %v702_v40 = vsel %vm470_vm9, %v655_v35, -inf }
 0x33a   :  { %700 = vmax.xlane.f32.xlu1 %v699_v39  ;;  %703 = vmax.xlane.f32.xlu2 %v702_v40  ;;  %v1536_v39 = vpack.i.bf16 %v1936_v5, %v1925_v0 }
 0x33c   :  { %v681_v42 = vpop.f32.mrf.mxu2 }
 0x33d   :  { %v682_v46 = vadd.f32 %v1551_v41, %v681_v42 }
 0x33f   :  { %v705_v47 = vsel %vm470_vm9, %v682_v46, -inf }
 0x340   :  { %706 = vmax.xlane.f32.xlu0 %v705_v47 }
 0x342   :  { %688 = vmax.xlane.f32.xlu2 %v687_v48  ;;  %697 = vmax.xlane.f32.xlu1 %v696_v50 }
 0x354   :  { %1527 = vrot.lane.b32.xlu0 %v1526_v51, %s1717_s14 }
 0x38d   :  { %v686_v52 = vpop.xlane.xlu2 %685 }
 0x38e   :  { %v708_v53 = vsub.f32 %v493_v18, %v686_v52 }
 0x390   :  { %v716_v54 = vmul.f32 1.442695, %v708_v53 }
 0x392   :  { %1561 = vpow2.f32 %v716_v54 }
 0x398   :  { %v1978_v55 = vpop.eup %1561 }
 0x399   :  { %v732_v56 = vsel %vm470_vm9, %v1978_v55, 0.0 }
 0x39a   :  { %733 = vadd.xlane.f32.xlu0 %v732_v56 }
 0x3a1   :  { %v692_v57 = vpop.xlane.xlu0 %691 }
 0x3a2   :  { %v710_v59 = vsub.f32 %v547_v23, %v692_v57 }
 0x3a4   :  { %v720_v60 = vmul.f32 1.442695, %v710_v59 }
 0x3a5   :  { %v695_v62 = vpop.xlane.xlu1 %694 }
 0x3a6   :  { %1563 = vpow2.f32 %v720_v60  ;;  %v711_v1 = vsub.f32 %v574_v27, %v695_v62 }
 0x3a8   :  { %v722_v49 = vmul.f32 1.442695, %v711_v1 }
 0x3aa   :  { %1565 = vpow2.f32 %v722_v49 }
 0x3ac   :  { %v1982_v61 = vpop.eup %1563 }
 0x3ad   :  { %v738_v2 = vsel %vm470_vm9, %v1982_v61, 0.0  ;;  %v701_v3 = vpop.xlane.xlu1 %700  ;;  %v704_v6 = vpop.xlane.xlu2 %703 }
 0x3ae   :  { %739 = vadd.xlane.f32.xlu1 %v738_v2  ;;  %v714_v7 = vsub.f32 %v655_v35, %v704_v6  ;;  %v713_v24 = vsub.f32 %v1967_v33, %v701_v3 }
 0x3b0   :  { %v1566_v8 = vpop.eup %1565  ;;  %v728_v9 = vmul.f32 1.442695, %v714_v7  ;;  %v726_v25 = vmul.f32 1.442695, %v713_v24 }
 0x3b1   :  { %v741_v11 = vsel %vm470_vm9, %v1566_v8, 0.0 }
 0x3b2   :  { %742 = vadd.xlane.f32.xlu2 %v741_v11  ;;  %1567 = vpow2.f32 %v728_v9 }
 0x3b3   :  { %v707_v12 = vpop.xlane.xlu0 %706 }
 0x3b4   :  { %v715_v13 = vsub.f32 %v682_v46, %v707_v12 }
 0x3b5   :  { %v698_v15 = vpop.xlane.xlu1 %697  ;;  %v689_v16 = vpop.xlane.xlu2 %688 }
 0x3b6   :  { %v730_v17 = vmul.f32 1.442695, %v715_v13  ;;  %v712_v18 = vsub.f32 %v601_v44, %v698_v15  ;;  %v709_v19 = vsub.f32 %v520_v43, %v689_v16 }
 0x3b8   :  { %1569 = vpow2.f32 %v730_v17  ;;  %v724_v21 = vmul.f32 1.442695, %v712_v18  ;;  %v718_v22 = vmul.f32 1.442695, %v709_v19  ;;  %v1987_v23 = vpop.eup %1567 }
 0x3b9   :  { %v750_v20 = vsel %vm470_vm9, %v1987_v23, 0.0 }
 0x3ba   :  { %1571 = vpow2.f32 %v724_v21  ;;  %751 = vadd.xlane.f32.xlu2 %v750_v20 }
 0x3bb   :  { %1573 = vpow2.f32 %v718_v22 }
 0x3bc   :  { %1575 = vpow2.f32 %v726_v25 }
 0x3be   :  { %v1570_v26 = vpop.eup %1569 }
 0x3bf   :  { %v753_v27 = vsel %vm470_vm9, %v1570_v26, 0.0 }
 0x3c0   :  { %v1572_v28 = vpop.eup %1571  ;;  %754 = vadd.xlane.f32.xlu1 %v753_v27 }
 0x3c1   :  { %v1574_v29 = vpop.eup %1573  ;;  %v744_v30 = vsel %vm470_vm9, %v1572_v28, 0.0 }
 0x3c2   :  { %v735_v31 = vsel %vm470_vm9, %v1574_v29, 0.0  ;;  %745 = vadd.xlane.f32.xlu2 %v744_v30  ;;  %v1995_v33 = vpop.eup %1575 }
 0x3c3   :  { %736 = vadd.xlane.f32.xlu0 %v735_v31  ;;  %v747_v36 = vsel %vm470_vm9, %v1995_v33, 0.0 }
 0x3c6   :  { %v1528_v32 = vpop.permute.xlu0 %1527 }
 0x3c7   :  { %v1530_v34 = vunpack.i.h.bf16 %v1528_v32  ;;  %v1529_v35 = vunpack.i.l.bf16 %v1528_v32 }
 0x3c9   :  { %793 = vmatpush.msra.mxu3 %v1529_v35  ;;  %871 = vmatpush.msra.mxu2 %v1530_v34 }
 0x3ca   :  { %748 = vadd.xlane.f32.xlu2 %v747_v36 }
 0x3d7   :  { %928 = vrot.lane.b32.xlu0 %v1931_v4, %s1717_s14 }
 0x3d9   :  { %1532 = vrot.lane.b32.xlu1 %v1531_v38, %s1717_s14 }
 0x3df   :  { %902 = vrot.lane.b32.xlu0 %v1913_v58, %s1717_s14 }
 0x3e2   :  { %1537 = vrot.lane.b32.xlu2 %v1536_v39, %s1717_s14 }
 0x40d   :  { %v734_v40 = vpop.xlane.xlu0 %733 }
 0x40e   :  { %1577 = vrcp.f32 %v734_v40 }
 0x414   :  { %v1578_v41 = vpop.eup %1577 }
 0x415   :  { %v764_v42 = vmul.f32 %v1578_v41, %v1978_v55 }
 0x417   :  { %1463 = vmatmul.msk.f32.vlgmr.msra.gmra.mxu3 %vm470_vm9, %v764_v42 }
 0x421   :  { %v740_v58 = vpop.xlane.xlu1 %739 }
 0x425   :  { %v743_v4 = vpop.xlane.xlu2 %742 }
 0x426   :  { %1579 = vrcp.f32 %v743_v4 }
 0x42c   :  { %v1580_v37 = vpop.eup %1579 }
 0x42d   :  { %v767_v45 = vmul.f32 %v1580_v37, %v1566_v8  ;;  %v752_v43 = vpop.xlane.xlu2 %751 }
 0x42f   :  { %1466 = vmatmul.msk.f32.vlgmr.msra.gmra.mxu2 %vm470_vm9, %v767_v45 }
 0x433   :  { %v755_v46 = vpop.xlane.xlu1 %754 }
 0x434   :  { %1581 = vrcp.f32 %v755_v46 }
 0x435   :  { %v746_v44 = vpop.xlane.xlu2 %745 }
 0x436   :  { %1583 = vrcp.f32 %v746_v44  ;;  %v737_v5 = vpop.xlane.xlu0 %736 }
 0x437   :  { %1585 = vrcp.f32 %v740_v58 }
 0x438   :  { %1587 = vrcp.f32 %v737_v5 }
 0x439   :  { %1589 = vrcp.f32 %v752_v43 }
 0x43a   :  { %v1582_v47 = vpop.eup %1581 }
 0x43b   :  { %v771_v53 = vmul.f32 %v1582_v47, %v1570_v26 }
 0x43c   :  { %v1584_v48 = vpop.eup %1583 }
 0x43d   :  { %v749_v0 = vpop.xlane.xlu2 %748  ;;  %v768_v54 = vmul.f32 %v1584_v48, %v1572_v28  ;;  %v1586_v55 = vpop.eup %1585 }
 0x43e   :  { %v1588_v57 = vpop.eup %1587  ;;  %1591 = vrcp.f32 %v749_v0  ;;  %v766_v1 = vmul.f32 %v1586_v55, %v1982_v61 }
 0x43f   :  { %v765_v49 = vmul.f32 %v1588_v57, %v1574_v29  ;;  %v1590_v2 = vpop.eup %1589 }
 0x440   :  { %v770_v7 = vmul.f32 %v1590_v2, %v1987_v23 }
 0x444   :  { %v1592_v6 = vpop.eup %1591 }
 0x445   :  { %v1538_v50 = vpop.permute.xlu2 %1537  ;;  %v769_v8 = vmul.f32 %v1592_v6, %v1995_v33 }
 0x446   :  { %v1540_v51 = vunpack.i.h.bf16 %v1538_v50  ;;  %v1539_v52 = vunpack.i.l.bf16 %v1538_v50 }
 0x448   :  { %897 = vmatpush.msrb.mxu3 %v1539_v52  ;;  %975 = vmatpush.msrb.mxu2 %v1540_v51 }
 0x449   :  { %v929_v56 = vpop.permute.xlu0 %928  ;;  %1467 = vmatmul.msk.f32.vlgmr.msrb.gmra.mxu3 %vm470_vm9, %v768_v54  ;;  %1470 = vmatmul.msk.f32.vlgmr.msrb.gmra.mxu2 %vm470_vm9, %v771_v53 }
 0x44b   :  { %v1533_v59 = vpop.permute.xlu1 %1532 }
 0x44c   :  { %v1534_v60 = vunpack.i.l.bf16 %v1533_v59  ;;  %v1535_v62 = vunpack.i.h.bf16 %v1533_v59 }
 0x44e   :  { %819 = vmatpush.msrb.mxu0 %v1535_v62  ;;  %845 = vmatpush.msra.mxu1 %v1534_v60 }
 0x44f   :  { %1464 = vmatmul.msk.f32.vlgmr.msrb.gmra.mxu0 %vm470_vm9, %v765_v49  ;;  %1465 = vmatmul.msk.f32.vlgmr.msra.gmra.mxu1 %vm470_vm9, %v766_v1 }
 0x450   :  { %949 = vmatpush.msrb.mxu1 %v929_v56 }
 0x451   :  { %v903_v3 = vpop.permute.xlu0 %902 }
 0x452   :  { %923 = vmatpush.msra.mxu0 %v903_v3 }
 0x457   :  { %1468 = vmatmul.msk.f32.vlgmr.msra.gmra.mxu0 %vm470_vm9, %v769_v8  ;;  %1469 = vmatmul.msk.f32.vlgmr.msrb.gmra.mxu1 %vm470_vm9, %v770_v7 }
 0x49a   :  { %v795_v61 = vpop.f32.mrf.mxu3 }
 0x49b   :  { %v982_v11 = vrot.slane %v795_v61, 4 }
 0x4b2   :  { %v873_v9 = vpop.f32.mrf.mxu2 }
 0x4b3   :  { %v992_v12 = vrot.slane %v873_v9, 4 }
 0x4cc   :  { %v821_v13 = vpop.f32.mrf.mxu0  ;;  %v847_v15 = vpop.f32.mrf.mxu1 }
 0x4cd   :  { %v993_v16 = vsel %vm215_vm8, %v992_v12, %v821_v13  ;;  %v994_v17 = vrot.slane %v821_v13, 4  ;;  %v980_v18 = vrot.slane %v847_v15, 4  ;;  %v983_v19 = vsel %vm215_vm8, %v847_v15, %v982_v11  ;;  %v899_v28 = vpop.f32.mrf.mxu3  ;;  %v977_v29 = vpop.f32.mrf.mxu2 }
 0x4ce   :  { %v999_v21 = vperm.slane %v993_v16, %v1824_v63  ;;  %v991_v22 = vperm.slane %v983_v19, %v1824_v63  ;;  %v1038_v39 = vrot.slane %v899_v28, 4  ;;  %v1048_v40 = vrot.slane %v977_v29, 4 }
 0x4cf   :  { %v995_v23 = vsel %vm215_vm8, %v873_v9, %v994_v17  ;;  %v981_v24 = vsel %vm215_vm8, %v980_v18, %v795_v61 }
 0x4d0   :  { %v1003_v20 = vperm.slane %v995_v23, %v1824_v63  ;;  %v1004_v25 = vrot.slane %v999_v21, 4  ;;  %v987_v26 = vperm.slane %v981_v24, %v1824_v63  ;;  %v1018_v27 = vrot.slane %v991_v22, 4 }
 0x4d2   :  { %v1016_v30 = vrot.slane %v1003_v20, 4  ;;  %v1005_v31 = vsel %vm215_vm8, %v1004_v25, %v987_v26  ;;  %v1006_v32 = vrot.slane %v987_v26, 4  ;;  %v1019_v33 = vsel %vm215_vm8, %v1003_v20, %v1018_v27 }
 0x4d3   :  { %v1011_v34 = vperm.slane %v1005_v31, %v1832_v14  ;;  %v1027_v35 = vperm.slane %v1019_v33, %v1832_v14 }
 0x4d4   :  { %v1007_v36 = vsel %vm215_vm8, %v999_v21, %v1006_v32  ;;  %v1017_v38 = vsel %vm215_vm8, %v1016_v30, %v991_v22  ;;  %v925_v41 = vpop.f32.mrf.mxu0  ;;  %v951_v42 = vpop.f32.mrf.mxu1 }
 0x4d5   :  { %v1015_v4 = vperm.slane %v1007_v36, %v1832_v14  ;;  %v1023_v37 = vperm.slane %v1017_v38, %v1832_v14  ;;  %v1028_v45 = vrot.slane %v1011_v34, 4  ;;  %v1034_v43 = vrot.slane %v1027_v35, 4 }
 0x4d6   :  { %v1049_v58 = vsel %vm215_vm8, %v1048_v40, %v925_v41  ;;  %v1050_v44 = vrot.slane %v925_v41, 4  ;;  %v1036_v46 = vrot.slane %v951_v42, 4  ;;  %v1039_v0 = vsel %vm215_vm8, %v951_v42, %v1038_v39 }
 0x4d7   :  { %v1030_v5 = vrot.slane %v1015_v4, 4  ;;  %v1032_v47 = vrot.slane %v1023_v37, 4  ;;  %v1035_v48 = vsel %vm215_vm8, 0.0, %v1034_v43  ;;  %v1103_v50 = vsel %vm215_vm8, %v1034_v43, %v1023_v37 }
 0x4d8   :  { %v1107_v51 = vperm.slane %v1103_v50, %v1824_v63  ;;  %v1108_v52 = vrot.slane %v1035_v48, 4  ;;  %v1051_v53 = vsel %vm215_vm8, %v977_v29, %v1050_v44  ;;  %v1055_v54 = vperm.slane %v1049_v58, %v1824_v63 }
 0x4d9   :  { %v1033_v55 = vsel %vm215_vm8, 0.0, %v1032_v47  ;;  %v1059_v56 = vperm.slane %v1051_v53, %v1824_v63  ;;  %v1037_v57 = vsel %vm215_vm8, %v1036_v46, %v899_v28  ;;  %v1047_v59 = vperm.slane %v1039_v0, %v1824_v63 }
 0x4da   :  { %v1060_v60 = vrot.slane %v1055_v54, 4  ;;  %v1043_v62 = vperm.slane %v1037_v57, %v1824_v63  ;;  %v1029_v1 = vsel %vm215_vm8, 0.0, %v1028_v45  ;;  %v1031_v49 = vsel %vm215_vm8, 0.0, %v1030_v5 }
 0x4db   :  { %v1072_v2 = vrot.slane %v1059_v56, 4  ;;  %v1074_v3 = vrot.slane %v1047_v59, 4  ;;  %v1092_v6 = vsel %vm215_vm8, %v1030_v5, %v1011_v34  ;;  %v1097_v7 = vrot.slane %v1031_v49, 4 }
 0x4dc   :  { %v1061_v8 = vsel %vm215_vm8, %v1060_v60, %v1043_v62  ;;  %v1062_v61 = vrot.slane %v1043_v62, 4  ;;  %v1096_v9 = vperm.slane %v1092_v6, %v1824_v63  ;;  %v1109_v11 = vsel %vm215_vm8, %v1108_v52, %v1033_v55 }
 0x4dd   :  { %v1067_v12 = vperm.slane %v1061_v8, %v1832_v14  ;;  %v1073_v13 = vsel %vm215_vm8, %v1072_v2, %v1047_v59  ;;  %v1075_v15 = vsel %vm215_vm8, %v1059_v56, %v1074_v3  ;;  %v1098_v16 = vsel %vm215_vm8, %v1097_v7, %v1029_v1 }
 0x4de   :  { %v1063_v17 = vsel %vm215_vm8, %v1055_v54, %v1062_v61  ;;  %v1079_v18 = vperm.slane %v1073_v13, %v1832_v14  ;;  %v1083_v19 = vperm.slane %v1075_v15, %v1832_v14  ;;  %v1102_v21 = vperm.slane %v1098_v16, %v1824_v63 }
 0x4df   :  { %v1071_v22 = vperm.slane %v1063_v17, %v1832_v14  ;;  %v1084_v23 = vrot.slane %v1067_v12, 4  ;;  %v1113_v24 = vperm.slane %v1109_v11, %v1824_v63  ;;  %v1116_v20 = vrot.slane %v1096_v9, 4 }
 0x4e0   :  { %v1088_v25 = vrot.slane %v1079_v18, 4  ;;  %v1090_v26 = vrot.slane %v1083_v19, 4  ;;  %v1128_v27 = vrot.slane %v1107_v51, 4  ;;  %v1114_v28 = vrot.slane %v1102_v21, 4  ;;  %v1234_v19 = vld [vmem:[%s2185_s6 + $0x10] sm:$0xff] }
 0x4e1   :  { %v1086_v29 = vrot.slane %v1071_v22, 4  ;;  %v1117_v30 = vsel %vm215_vm8, %v1102_v21, %v1116_v20  ;;  %v1126_v31 = vrot.slane %v1113_v24, 4  ;;  %v1085_v32 = vsel %vm215_vm8, 0.0, %v1084_v23  ;;  %v1233_v21 = vld [vmem:[%s2185_s6 + $0x8] sm:$0xff]  ;;  %v1232_v22 = vld [vmem:[%s2185_s6] sm:$0xff] }
 0x4e2   :  { %v1089_v33 = vsel %vm215_vm8, 0.0, %v1088_v25  ;;  %v1091_v34 = vsel %vm215_vm8, 0.0, %v1090_v26  ;;  %v1157_v35 = vsel %vm215_vm8, %v1090_v26, %v1079_v18  ;;  %v1125_v36 = vperm.slane %v1117_v30, %v1832_v14 }
 0x4e3   :  { %v1161_v38 = vperm.slane %v1157_v35, %v1824_v63  ;;  %v1162_v39 = vrot.slane %v1091_v34, 4  ;;  %v1129_v40 = vsel %vm215_vm8, %v1113_v24, %v1128_v27  ;;  %v1115_v41 = vsel %vm215_vm8, %v1114_v28, %v1096_v9  ;;  %v1552_v34 = vld [vmem:[%s2186_s7] ss:$0 sm:$0xff] }
 0x4e4   :  { %v1137_v42 = vperm.slane %v1129_v40, %v1832_v14  ;;  %v1121_v4 = vperm.slane %v1115_v41, %v1832_v14  ;;  %v1127_v37 = vsel %vm215_vm8, %v1126_v31, %v1107_v51  ;;  %v1087_v45 = vsel %vm215_vm8, 0.0, %v1086_v29 }
 0x4e5   :  { %v1133_v43 = vperm.slane %v1127_v37, %v1832_v14  ;;  %v1146_v58 = vsel %vm215_vm8, %v1086_v29, %v1067_v12  ;;  %v1151_v44 = vrot.slane %v1087_v45, 4  ;;  %v1163_v46 = vsel %vm215_vm8, %v1162_v39, %v1089_v33 }
 0x4e6   :  { %v1142_v0 = vrot.slane %v1137_v42, 4  ;;  %v1140_v5 = vrot.slane %v1121_v4, 4  ;;  %v1150_v47 = vperm.slane %v1146_v58, %v1824_v63  ;;  %v1167_v48 = vperm.slane %v1163_v46, %v1824_v63 }
 0x4e7   :  { %v1138_v50 = vrot.slane %v1133_v43, 4  ;;  %v1152_v52 = vsel %vm215_vm8, %v1151_v44, %v1085_v32  ;;  %v1182_v53 = vrot.slane %v1161_v38, 4  ;;  %v1144_v6 = vrot.slane %v1125_v36, 4 }
 0x4e8   :  { %v1143_v51 = vsel %vm215_vm8, %v1142_v0, %v1125_v36  ;;  %v1141_v54 = vsel %vm215_vm8, %v1133_v43, %v1140_v5  ;;  %v1156_v55 = vperm.slane %v1152_v52, %v1824_v63  ;;  %v1170_v56 = vrot.slane %v1150_v47, 4 }
 0x4e9   :  { %1210 = vrot.lane.b32.xlu0 %v1143_v51, %s1707_s15  ;;  %1202 = vrot.lane.b32.xlu1 %v1141_v54, %s1718_s16  ;;  %v1183_v57 = vsel %vm215_vm8, %v1167_v48, %v1182_v53  ;;  %v1180_v59 = vrot.slane %v1167_v48, 4  ;;  %v1139_v60 = vsel %vm215_vm8, %v1138_v50, %v1121_v4  ;;  %v1145_v13 = vsel %vm215_vm8, %v1137_v42, %v1144_v6  ;;  %v1598_v4 = vld [vmem:[%s2179_s0 + $0x8] sm:$0xff]  ;;  %v1502_v54 = vld [vmem:[#allocation7 + $0x8] sm:$0xff] }
 0x4ea   :  { %v1171_v62 = vsel %vm215_vm8, %v1156_v55, %v1170_v56  ;;  %v1191_v1 = vperm.slane %v1183_v57, %v1832_v14  ;;  %v1168_v49 = vrot.slane %v1156_v55, 4  ;;  %1349 = vmatpush.bf16.msrb.mxu0 %v1502_v54  ;;  %v1501_v56 = vld [vmem:[#allocation7] sm:$0xff] }
 0x4eb   :  { %v1179_v2 = vperm.slane %v1171_v62, %v1832_v14  ;;  %v1181_v63 = vsel %vm215_vm8, %v1180_v59, %v1161_v38  ;;  %v1597_v38 = vld [vmem:[%s2179_s0] sm:$0xff] }
 0x4ec   :  { %v1196_v3 = vrot.slane %v1191_v1, 4  ;;  %v1169_v7 = vsel %vm215_vm8, %v1168_v49, %v1150_v47  ;;  %v1187_v8 = vperm.slane %v1181_v63, %v1832_v14 }
 0x4ed   :  { %v1175_v61 = vperm.slane %v1169_v7, %v1832_v14  ;;  %v1198_v17 = vrot.slane %v1179_v2, 4  ;;  %v1235_v14 = vld [vmem:[%s2185_s6 + $0x18] sm:$0xff] }
 0x4ee   :  { %v1197_v9 = vsel %vm215_vm8, %v1196_v3, %v1179_v2  ;;  %v1192_v11 = vrot.slane %v1187_v8, 4  ;;  %1258 = vmatpush.msra.mxu3 %v1235_v14  ;;  %1350 = vmatpush.bf16.msrb.mxu0 %v1501_v56  ;;  %v1600_v14 = vld [vmem:[%s2182_s3] ss:$0 sm:$0xff] }
 0x4ef   :  { %v1194_v12 = vrot.slane %v1175_v61, 4  ;;  %v1199_v18 = vsel %vm215_vm8, %v1191_v1, %v1198_v17 }
 0x4f0   :  { %v1193_v15 = vsel %vm215_vm8, %v1192_v11, %v1175_v61  ;;  %1259 = vmatpush.msra.mxu3 %v1234_v19 }
 0x4f1   :  { %1212 = vrot.lane.b32.xlu0 %v1197_v9, %s1707_s15  ;;  %1218 = vrot.lane.b32.xlu1 %v1145_v13, %s1719_s4  ;;  %v1195_v16 = vsel %vm215_vm8, %v1187_v8, %v1194_v12  ;;  %s1424_s15 = sshll.u32 %s2191_s12, 4  ;;  %s1425_s15 = int_to_ptr.hbm [resolvable:$true] %s1424_s15 }
 0x4f2   :  { %1204 = vrot.lane.b32.xlu2 %v1195_v16, %s1718_s16  ;;  %1260 = vmatpush.msra.mxu3 %v1233_v21 }
 0x4f4   :  { %1261 = vmatpush.msra.mxu3 %v1232_v22 }
 0x4f9   :  { %1220 = vrot.lane.b32.xlu1 %v1199_v18, %s1719_s4 }
 0x54c   :  { %v1205_v28 = vpop.permute.xlu2 %1204 }
 0x54d   :  { %v1225_v30 = vsel %vm470_vm9, %v1193_v15, %v1205_v28  ;;  %v1599_v15 = vld [vmem:[%s2181_s2] ss:$0 sm:$0xff] }
 0x55b   :  { %v1203_v23 = vpop.permute.xlu1 %1202  ;;  %v1211_v24 = vpop.permute.xlu0 %1210 }
 0x55c   :  { %v1224_v20 = vsel %vm470_vm9, %v1139_v60, %v1203_v23  ;;  %v1506_v23 = vld [vmem:[%s2189_s10 + $0x18] sm:$0xff] }
 0x55d   :  { %v1227_v26 = vsel %vm1226_vm10, %v1224_v20, %v1211_v24  ;;  %1404 = vmatpush.bf16.msra.mxu1 %v1506_v23  ;;  %v1505_v24 = vld [vmem:[%s2189_s10 + $0x10] sm:$0xff]  ;;  %v1504_v20 = vld [vmem:[%s2189_s10 + $0x8] sm:$0xff] }
 0x561   :  { %1405 = vmatpush.bf16.msra.mxu1 %v1505_v24 }
 0x563   :  { %v1219_v25 = vpop.permute.xlu1 %1218  ;;  %v1213_v29 = vpop.permute.xlu0 %1212 }
 0x564   :  { %v1230_v27 = vsel %vm1229_vm11, %v1227_v26, %v1219_v25  ;;  %v1228_v31 = vsel %vm1226_vm10, %v1225_v30, %v1213_v29  ;;  %v1503_v25 = vld [vmem:[%s2189_s10] sm:$0xff] }
 0x565   :  { %1471 = vmatmul.msk.f32.vlgmr.msra.gmra.mxu3 %vm94_vm0, %v1230_v27  ;;  %1406 = vmatpush.bf16.msra.mxu1 %v1504_v20  ;;  %v1553_v27 = vld [vmem:[%s2188_s9] ss:$0 sm:$0xff] }
 0x569   :  { %1407 = vmatpush.bf16.msra.mxu1 %v1503_v25 }
 0x56b   :  { %v1221_v32 = vpop.permute.xlu1 %1220 }
 0x56c   :  { %v1231_v33 = vsel %vm1229_vm11, %v1228_v31, %v1221_v32 }
 0x56d   :  { %1472 = vmatmul.msk.f32.gmra.mxu3 %vm94_vm0, %v1231_v33 }
 0x5e8   :  { %v1263_v35 = vpop.f32.mrf.mxu3 }
 0x5e9   :  { %v1264_v36 = vadd.f32 %v1552_v34, %v1263_v35 }
 0x5eb   :  { %v2127_v39 = vadd.f32 %v1597_v38, %v1264_v36 }
 0x5ed   :  { %v1271_v40 = vsel %vm94_vm0, %v2127_v39, 0.0 }
 0x5ee   :  { %1272 = vadd.xlane.f32.xlu2 %v1271_v40 }
 0x5f0   :  { %v1266_v41 = vpop.f32.mrf.mxu3 }
 0x5f1   :  { %v1267_v42 = vadd.f32 %v1552_v34, %v1266_v41  ;;  %v1554_v34 = vld [vmem:[%s2190_s11] ss:$0 sm:$0xff]  ;;  %s1721_s11 = smov 128  }
 0x5f3   :  { %v2134_v37 = vadd.f32 %v1598_v4, %v1267_v42 }
 0x5f5   :  { %v1274_v45 = vsel %vm94_vm0, %v2134_v37, 0.0 }
 0x5f6   :  { %1275 = vadd.xlane.f32.xlu0 %v1274_v45 }
 0x661   :  { %v1273_v43 = vpop.xlane.xlu2 %1272 }
 0x662   :  { %v1277_v58 = vmul.f32 %v1273_v43, %v1806_v10 }
 0x664   :  { %v1279_v44 = vsub.f32 %v2127_v39, %v1277_v58 }
 0x666   :  { %v1281_v46 = vmul.f32 %v1279_v44, %v1279_v44 }
 0x668   :  { %v1283_v0 = vsel %vm94_vm0, %v1281_v46, 0.0 }
 0x669   :  { %1284 = vadd.xlane.f32.xlu1 %v1283_v0  ;;  %v1276_v5 = vpop.xlane.xlu0 %1275 }
 0x66a   :  { %v1278_v47 = vmul.f32 %v1276_v5, %v1806_v10 }
 0x66c   :  { %v1280_v48 = vsub.f32 %v2134_v37, %v1278_v47 }
 0x66e   :  { %v1282_v50 = vmul.f32 %v1280_v48, %v1280_v48 }
 0x670   :  { %v1286_v52 = vsel %vm94_vm0, %v1282_v50, 0.0 }
 0x671   :  { %1287 = vadd.xlane.f32.xlu2 %v1286_v52 }
 0x6dc   :  { %v1285_v53 = vpop.xlane.xlu1 %1284 }
 0x6dd   :  { %v1289_v51 = vmul.f32 %v1285_v53, %v1806_v10 }
 0x6df   :  { %v1291_v55 = vadd.f32 1e-06, %v1289_v51 }
 0x6e1   :  { %1593 = vrsqrt.f32 %v1291_v55  ;;  %vm1299_vm13 = vweird.f32 %v1291_v55 }
 0x6e4   :  { %v1288_v57 = vpop.xlane.xlu2 %1287 }
 0x6e5   :  { %v1290_v59 = vmul.f32 %v1288_v57, %v1806_v10 }
 0x6e7   :  { %v1594_v60 = vpop.eup %1593  ;;  %v1292_v62 = vadd.f32 1e-06, %v1290_v59 }
 0x6e8   :  { %v1294_v1 = vmul.f32 %v1594_v60, %v1291_v55  ;;  %vm1300_vm12 = vweird.f32 %v1594_v60 }
 0x6e9   :  { %1595 = vrsqrt.f32 %v1292_v62  ;;  %vm1301_vm14 = vmor %vm1299_vm13, %vm1300_vm12  ;;  %vm1309_vm1 = vweird.f32 %v1292_v62 }
 0x6ea   :  { %v1295_v49 = vmul.f32 %v1594_v60, %v1294_v1 }
 0x6ec   :  { %v1296_v2 = vmul.f32 0.5, %v1295_v49 }
 0x6ee   :  { %v1297_v63 = vsub.f32 1.5, %v1296_v2 }
 0x6ef   :  { %v1596_v3 = vpop.eup %1595 }
 0x6f0   :  { %v1298_v6 = vmul.f32 %v1594_v60, %v1297_v63  ;;  %v1304_v7 = vmul.f32 %v1596_v3, %v1292_v62  ;;  %vm1310_vm15 = vweird.f32 %v1596_v3 }
 0x6f1   :  { %vm1311_vm2 = vmor %vm1309_vm1, %vm1310_vm15 }
 0x6f2   :  { %v1305_v8 = vmul.f32 %v1596_v3, %v1304_v7  ;;  %v1302_v61 = vsel %vm1301_vm14, %v1594_v60, %v1298_v6 }
 0x6f3   :  { %v1313_v12 = vmul.f32 %v1302_v61, %v1279_v44 }
 0x6f4   :  { %v1306_v9 = vmul.f32 0.5, %v1305_v8 }
 0x6f5   :  { %v1315_v16 = vmul.f32 %v1599_v15, %v1313_v12 }
 0x6f6   :  { %v1307_v11 = vsub.f32 1.5, %v1306_v9 }
 0x6f7   :  { %v1317_v19 = vadd.f32 %v1600_v14, %v1315_v16 }
 0x6f8   :  { %v1308_v10 = vmul.f32 %v1596_v3, %v1307_v11 }
 0x6fa   :  { %v1312_v13 = vsel %vm1311_vm2, %v1596_v3, %v1308_v10 }
 0x6fb   :  { %v1314_v17 = vmul.f32 %v1312_v13, %v1280_v48 }
 0x6fd   :  { %v1316_v18 = vmul.f32 %v1599_v15, %v1314_v17 }
 0x6ff   :  { %v1318_v21 = vadd.f32 %v1600_v14, %v1316_v18 }
 0x701   :  { %v1319_v22 = vpack.c.bf16 %v1318_v21, %v1317_v19 }
 0x703   :  { %1481 = vmatmul.msk.bf16.vlgmr.msrb.gmra.mxu0 %vm94_vm0, %v1319_v22 }
 0x780   :  { %v1352_v26 = vpop.f32.mrf.mxu0 }
 0x781   :  { %v1353_v28 = vadd.f32 %v1553_v27, %v1352_v26 }
 0x783   :  { %v1357_v31 = vmax.f32 %v1353_v28, 0.0 }
 0x788   :  { %v1354_v29 = vpop.f32.mrf.mxu0 }
 0x789   :  { %v1355_v30 = vadd.f32 %v1553_v27, %v1354_v29 }
 0x78b   :  { %v1358_v32 = vmax.f32 %v1355_v30, 0.0 }
 0x78d   :  { %v1359_v33 = vpack.c.bf16 %v1358_v32, %v1357_v31 }
 0x78f   :  { %1498 = vmatmul.msk.bf16.vlgmr.msra.gmra.mxu1 %vm1396_vm3, %v1359_v33 }
 0x80c   :  { %v1409_v35 = vpop.f32.mrf.mxu1 }
 0x80d   :  { %v1410_v36 = vadd.f32 %v1554_v34, %v1409_v35 }
 0x80f   :  { %v1414_v38 = vadd.f32 %v1410_v36, %v2127_v39 }
 0x811   :  { %1416 = vst.msk [vmem:[#allocation8] sm:$0xff] %vm94_vm0, %v1414_v38 }
 0x814   :  { %v1411_v40 = vpop.f32.mrf.mxu1 }
 0x815   :  { %v1412_v41 = vadd.f32 %v1554_v34, %v1411_v40 }
 0x817   :  { %v1415_v42 = vadd.f32 %v1412_v41, %v2134_v37 }
 0x819   :  { %1417 = vst.msk [vmem:[#allocation8 + $0x8] sm:$0xff] %vm94_vm0, %v1415_v42 }
 0x81a   :  { %1430 = dma.vmem_to_hbm [thread:$0]  %s1423_s21, 256, %s1425_s15, [#allocation4], %s1721_s11, %s1721_s11, %s1718_s16  }
 0x81b   :  { %1701 = dma.done.wait [#allocation4], 256  }
 0x81c   :  { %1702 = vsyncadd [#allocation4], 4294967040 }
 0x81d   :  { %1435 = vsyncpa [#allocation3], 1 }
 0x81e   :  { %1436 = vsyncpa [#allocation6], 1 }
 0x81f   :  { %1437 = vsyncpa [#allocation4], 1 }

</bundles_post_ra>
